<compile_context>
chip_gen: v5e
topology: v5e:2x2
jax: 0.10.0
libtpu: 0.0.40
codegen_flags: <defaults>
</compile_context>

<pallas_src>
import jax
import jax.numpy as jnp
from jax.experimental import pallas as pl
from jax.experimental.pallas import tpu as pltpu

_LANES = 128
_MAX_TN = 2048  # caps the [tn,1]/[tn,V] f32 epilogue scratch so it stays tiny vs VMEM


def _cdiv(a, b):
    return -(-a // b)


def _round_up(x, m):
    return _cdiv(x, m) * m


def _round_down(x, m):
    return (x // m) * m


def _sublane_align(itemsize):
    # vreg sublane packing: f32 -> 8, bf16 -> 16, int8/fp8 -> 32.
    return max(8, 32 // itemsize)


def _vmem_budgets():
    """Generation-aware (vmem_limit_bytes, per-x-buffer budget, w2 residency budget)."""
    try:
        cap = pltpu.get_tpu_info().vmem_capacity_bytes
    except Exception:
        cap = 64 * 1024 * 1024  # be conservative if the query is unavailable
    if cap >= 96 * 1024 * 1024:
        # v5e / v6e: 128 MiB physical VMEM -> raise the scoped limit and use big tiles.
        return 64 * 1024 * 1024, 12 * 1024 * 1024, 16 * 1024 * 1024
    # v7x (64 MiB physical) or unknown: stay under the 32 MiB scoped default.
    return 28 * 1024 * 1024, 7 * 1024 * 1024, 8 * 1024 * 1024


def _pick_tiles(N, K, itemsize, x_buf_budget):
    """Pick (tn, tk).  Prefer tk == K (fully contiguous rows) before growing tn."""
    align = _sublane_align(itemsize)
    row_bytes = K * itemsize
    max_rows = max(1, x_buf_budget // row_bytes)
    if N <= max_rows:
        tn, tk = N, K
    elif max_rows >= align:
        tn, tk = _round_down(max_rows, align), K
    else:
        # Even `align` full rows exceed the budget: tile the reduction axis too.
        tn = align if N > align else N
        tk = max(_LANES, _round_down(x_buf_budget // (tn * itemsize), _LANES))
        if tk >= K:
            tk = K
    # Megacore: give the "parallel" N axis >= 2 blocks (v7x has 2 TensorCores),
    # whenever N is large enough to split while staying sublane-aligned.
    if _cdiv(N, tn) < 2 and N >= 2 * align:
        tn = _round_up(_cdiv(N, 2), align)
    tn = min(tn, _MAX_TN)
    return tn, tk


def _make_group_schema_kernel(*, K, tk, num_k, w2_resident):
    need_mask = (num_k * tk != K)  # K remainder on the last k block

    def kernel(b_ref, x_ref, w2_ref, out_ref, acc_ref, scores_ref):
        # b_ref:      [1]         SMEM  fused bias (scalar-prefetch operand)
        # x_ref:      [tn, tk]    VMEM  x tile for (view v, batch tile n, reduction tile k)
        # w2_ref:     [1, Kw|tk]  VMEM  fused conv (x) fc weight (resident or k-tiled)
        # out_ref:    [tn, V]     VMEM  softmaxed view scores for this batch tile
        # acc_ref:    [tn, 1]     VMEM  f32 running dot-product accumulator over k
        # scores_ref: [tn, V]     VMEM  per-view raw scores (staged; avoids out RMW)
        v = pl.program_id(1)
        k = pl.program_id(2)
        num_v = pl.num_programs(1)

        @pl.when(jnp.logical_and(v == 0, k == 0))
        def _():
            scores_ref[...] = jnp.zeros_like(scores_ref)

        @pl.when(k == 0)
        def _():
            acc_ref[...] = jnp.zeros_like(acc_ref)

        x = x_ref[...].astype(jnp.float32)
        if w2_resident and num_k > 1:
            start = pl.multiple_of(k * tk, _LANES)
            w = w2_ref[:, pl.ds(start, tk)].astype(jnp.float32)
        else:
            w = w2_ref[...].astype(jnp.float32)

        prod = x * w
        if need_mask:
            lane = jax.lax.broadcasted_iota(jnp.int32, prod.shape, 1)
            prod = jnp.where(k * tk + lane < K, prod, 0.0)

        # HBM-bound: Mosaic folds the per-vreg partials on the VALU and emits a single
        # cross-lane (XLU) reduce per step, so compute slots have ample slack here.
        acc_ref[...] += jnp.sum(prod, axis=-1, keepdims=True)

        @pl.when(k == num_k - 1)
        def _():
            z = acc_ref[...] + b_ref[0]                       # [tn, 1]
            a = jnp.abs(z)
            score = a / (1.0 + a)                             # == sigmoid(log(|z|))
            col = jax.lax.broadcasted_iota(jnp.int32, scores_ref.shape, 1) == v
            scores_ref[...] = jnp.where(col, score, scores_ref[...])

        @pl.when(jnp.logical_and(v == num_v - 1, k == num_k - 1))
        def _():
            # Numerically-stable softmax over views; tiny [tn, V] epilogue, single write.
            s = scores_ref[...]
            s = s - jnp.max(s, axis=1, keepdims=True)
            e = jnp.exp(s)
            out_ref[...] = e / jnp.sum(e, axis=1, keepdims=True)

    return kernel


@jax.jit
def group_schema(raw_view, wconv, bconv, wfc, bfc):
    """raw_view: [V, N, C, H, W] -> [N, V] float32 softmax-normalized view scores."""
    V, N, C, H, W = raw_view.shape
    K = C * H * W

    # Native-layout flatten of trailing dims (minor-dim merge only: NO transpose);
    # the (v, n) -> (n, v) reordering happens in the BlockSpec index_maps.
    x = raw_view.reshape(V, N, K)
    itemsize = x.dtype.itemsize  # bf16 inputs are accepted as-is (halves HBM bytes)

    # Algebraic fusion of the two rank-1 contractions (1x1 conv over C, fc over H*W).
    wc = wconv.reshape(C).astype(jnp.float32)
    wf = wfc.reshape(H * W).astype(jnp.float32)
    w2 = (wc[:, None] * wf[None, :]).reshape(K)
    b0 = (bconv.astype(jnp.float32).reshape(()) * jnp.sum(wf)
          + bfc.astype(jnp.float32).reshape(())).reshape(1)

    vmem_limit, x_buf_budget, w2_budget = _vmem_budgets()
    tn, tk = _pick_tiles(N, K, itemsize, x_buf_budget)
    num_n = _cdiv(N, tn)
    num_k = _cdiv(K, tk)
    grid = (num_n, V, num_k)

    # Zero-pad the (tiny) fused weight so every (1, tk) block / in-kernel slice is
    # in-bounds with exact zeros in the padded lanes.
    Kw = num_k * tk
    w2 = jnp.pad(w2, (0, Kw - K)).reshape(1, Kw)

    # Keep the fused weight fully VMEM-resident (constant block index -> DMA'd once)
    # whenever it fits; otherwise stream (1, tk) tiles along k.
    w2_resident = (2 * Kw * 4) <= w2_budget
    if w2_resident:
        w2_spec = pl.BlockSpec((1, Kw), lambda n, v, k, b: (0, 0))
    else:
        w2_spec = pl.BlockSpec((1, tk), lambda n, v, k, b: (0, k))

    kernel = _make_group_schema_kernel(K=K, tk=tk, num_k=num_k, w2_resident=w2_resident)

    cost = pl.CostEstimate(
        flops=2 * V * N * K,
        transcendentals=N * V,
        bytes_accessed=V * N * K * itemsize + Kw * 4 + N * V * 4 + 4,
    )

    return pl.pallas_call(
        kernel,
        out_shape=jax.ShapeDtypeStruct((N, V), jnp.float32),
        grid_spec=pltpu.PrefetchScalarGridSpec(
            num_scalar_prefetch=1,          # fused bias lands in SMEM before the grid runs
            grid=grid,
            in_specs=[
                # x[V, N, K]: index_map swaps (n, v) -> (v, n); the V dim is squeezed.
                # (Optional v7x experiment: pipeline_mode=pl.Buffered(3) if DMA gaps show.)
                pl.BlockSpec((pl.Squeezed(), tn, tk), lambda n, v, k, b: (v, n, k)),
                w2_spec,
            ],
            # The [tn, V] output block stays resident across the whole (v, k) sweep.
            out_specs=pl.BlockSpec((tn, V), lambda n, v, k, b: (n, 0)),
            scratch_shapes=[
                pltpu.VMEM((tn, 1), jnp.float32),   # running dot-product accumulator
                pltpu.VMEM((tn, V), jnp.float32),   # staged per-view scores
            ],
        ),
        compiler_params=pltpu.CompilerParams(
            # N tiles are independent -> shard across v7x's 2 TensorCores; V/K carry the
            # resident scores/accumulator state, so they must remain "arbitrary".
            dimension_semantics=("parallel", "arbitrary", "arbitrary"),
            vmem_limit_bytes=vmem_limit,
        ),
        cost_estimate=cost,
    )(b0, x, w2)


def group_schema_reference(raw_view, wconv, bconv, wfc, bfc):
    """Pure-JAX reference matching the PyTorch module."""
    V, N, C, H, W = raw_view.shape
    xf = raw_view.astype(jnp.float32)
    y = (jnp.einsum('vnchw,c->vnhw', xf, wconv.reshape(C).astype(jnp.float32))
         + bconv.astype(jnp.float32).reshape(()))
    z = (jnp.einsum('vnk,k->vn', y.reshape(V, N, H * W),
                    wfc.reshape(H * W).astype(jnp.float32))
         + bfc.astype(jnp.float32).reshape(()))
    s = jax.nn.sigmoid(jnp.log(jnp.abs(z)))          # [V, N]
    return jax.nn.softmax(s.T, axis=1)               # [N, V]


if __name__ == "__main__":
    # Small shapes consistent with [V, N, C, H, W]; fc in_features == H*W.
    V, N, C, H, W = 8, 2, 4, 16, 16

    key = jax.random.PRNGKey(0)
    k_x, k_wc, k_bc, k_wf, k_bf = jax.random.split(key, 5)

    raw_view = jax.random.normal(k_x, (V, N, C, H, W), dtype=jnp.float32)
    wconv = jax.random.normal(k_wc, (1, C, 1, 1), dtype=jnp.float32) * 0.1   # Conv2d(C,1,1) weight
    bconv = jax.random.normal(k_bc, (1,), dtype=jnp.float32) * 0.1           # Conv2d bias
    wfc = jax.random.normal(k_wf, (1, H * W), dtype=jnp.float32) * 0.05      # Linear(H*W, 1) weight
    bfc = jax.random.normal(k_bf, (1,), dtype=jnp.float32) * 0.1             # Linear bias

    out = jax.block_until_ready(group_schema(raw_view, wconv, bconv, wfc, bfc))
    ref = group_schema_reference(raw_view, wconv, bconv, wfc, bfc)

    assert out.shape == (N, V), out.shape
    assert jnp.allclose(out, ref, rtol=1e-4, atol=1e-5), (out, ref)

    print("KERNEL_OK")
</pallas_src>

<mosaic_0001>
module attributes {stable_mosaic.version = 11 : i64} {
  func.func @kernel(%arg0: i32, %arg1: i32, %arg2: i32, %arg3: memref<1xf32, #tpu.memory_space<smem>>, %arg4: memref<1x2x1024xf32, #tpu.memory_space<vmem>>, %arg5: memref<1x1024xf32, #tpu.memory_space<vmem>>, %arg6: memref<2x8xf32, #tpu.memory_space<vmem>>, %arg7: memref<2x1xf32, #tpu.memory_space<vmem>>, %arg8: memref<2x8xf32, #tpu.memory_space<vmem>>) attributes {dimension_semantics = [#tpu.dimension_semantics<parallel>, #tpu.dimension_semantics<arbitrary>, #tpu.dimension_semantics<arbitrary>], iteration_bounds = array<i64: 1, 8, 1>, scalar_prefetch = 1 : i64, scratch_operands = 2 : i64, tpu.core_type = #tpu.core_type<tc>, window_params = [{transform_indices = @transform_0, window_bounds = array<i64: 1, 2, 1024>}, {pipeline_mode = #tpu.pipeline_mode<synchronous>, transform_indices = @transform_1, window_bounds = array<i64: 1, 1024>}, {transform_indices = @transform_2, window_bounds = array<i64: 2, 8>}]} {
    %c0_i32 = arith.constant 0 : i32
    %0 = arith.cmpi eq, %arg1, %c0_i32 : i32
    %c0_i32_0 = arith.constant 0 : i32
    %1 = arith.cmpi eq, %arg2, %c0_i32_0 : i32
    %2 = arith.andi %0, %1 : i1
    %3 = arith.extui %2 : i1 to i32
    %c0_i32_1 = arith.constant 0 : i32
    %4 = arith.cmpi ne, %3, %c0_i32_1 : i32
    scf.if %4 {
      %cst_16 = arith.constant 0.000000e+00 : f32
      %26 = vector.broadcast %cst_16 : f32 to vector<2x8xf32>
      %c0_17 = arith.constant 0 : index
      %c0_18 = arith.constant 0 : index
      %27 = vector.load %arg8[%c0_17, %c0_18] : memref<2x8xf32, #tpu.memory_space<vmem>>, vector<2x8xf32>
      tpu.vector_store %arg8[%c0_17, %c0_18], %26 {strides = array<i32>} : memref<2x8xf32, #tpu.memory_space<vmem>>, vector<2x8xf32>,
    } else {
    }
    %c0_i32_2 = arith.constant 0 : i32
    %5 = arith.cmpi eq, %arg2, %c0_i32_2 : i32
    %6 = arith.extui %5 : i1 to i32
    %c0_i32_3 = arith.constant 0 : i32
    %7 = arith.cmpi ne, %6, %c0_i32_3 : i32
    scf.if %7 {
      %cst_16 = arith.constant 0.000000e+00 : f32
      %26 = vector.broadcast %cst_16 : f32 to vector<2x1xf32>
      %c0_17 = arith.constant 0 : index
      %c0_18 = arith.constant 0 : index
      %27 = vector.load %arg7[%c0_17, %c0_18] : memref<2x1xf32, #tpu.memory_space<vmem>>, vector<2x1xf32>
      tpu.vector_store %arg7[%c0_17, %c0_18], %26 {strides = array<i32>} : memref<2x1xf32, #tpu.memory_space<vmem>>, vector<2x1xf32>,
    } else {
    }
    %c0 = arith.constant 0 : index
    %c0_4 = arith.constant 0 : index
    %c0_5 = arith.constant 0 : index
    %8 = vector.load %arg4[%c0, %c0_4, %c0_5] : memref<1x2x1024xf32, #tpu.memory_space<vmem>>, vector<1x2x1024xf32>
    %9 = vector.shape_cast %8 : vector<1x2x1024xf32> to vector<2x1024xf32>
    %c0_6 = arith.constant 0 : index
    %c0_7 = arith.constant 0 : index
    %10 = vector.load %arg5[%c0_6, %c0_7] : memref<1x1024xf32, #tpu.memory_space<vmem>>, vector<1x1024xf32>
    %11 = vector.broadcast %10 : vector<1x1024xf32> to vector<2x1024xf32>
    %12 = arith.mulf %9, %11 : vector<2x1024xf32>
    %c0_8 = arith.constant 0 : index
    %c0_9 = arith.constant 0 : index
    %13 = vector.load %arg7[%c0_8, %c0_9] : memref<2x1xf32, #tpu.memory_space<vmem>>, vector<2x1xf32>
    %cst = arith.constant dense<0.000000e+00> : vector<2xf32>
    %14 = vector.multi_reduction <add>, %12, %cst [1] : vector<2x1024xf32> to vector<2xf32>
    %15 = vector.shape_cast %14 : vector<2xf32> to vector<2x1xf32>
    %16 = arith.addf %13, %15 : vector<2x1xf32>
    %c0_10 = arith.constant 0 : index
    %c0_11 = arith.constant 0 : index
    %17 = vector.load %arg7[%c0_10, %c0_11] : memref<2x1xf32, #tpu.memory_space<vmem>>, vector<2x1xf32>
    tpu.vector_store %arg7[%c0_10, %c0_11], %16 {strides = array<i32>} : memref<2x1xf32, #tpu.memory_space<vmem>>, vector<2x1xf32>,
    %c0_i32_12 = arith.constant 0 : i32
    %18 = arith.cmpi eq, %arg2, %c0_i32_12 : i32
    %19 = arith.extui %18 : i1 to i32
    %c0_i32_13 = arith.constant 0 : i32
    %20 = arith.cmpi ne, %19, %c0_i32_13 : i32
    scf.if %20 {
      %c0_16 = arith.constant 0 : index
      %c0_17 = arith.constant 0 : index
      %26 = vector.load %arg7[%c0_16, %c0_17] : memref<2x1xf32, #tpu.memory_space<vmem>>, vector<2x1xf32>
      %c0_18 = arith.constant 0 : index
      %27 = memref.load %arg3[%c0_18] : memref<1xf32, #tpu.memory_space<smem>>
      %28 = vector.broadcast %27 : f32 to vector<2x1xf32>
      %29 = arith.addf %26, %28 : vector<2x1xf32>
      %30 = math.absf %29 : vector<2x1xf32>
      %cst_19 = arith.constant 1.000000e+00 : f32
      %31 = vector.broadcast %cst_19 : f32 to vector<2x1xf32>
      %32 = arith.addf %31, %30 : vector<2x1xf32>
      %33 = arith.divf %30, %32 : vector<2x1xf32>
      %34 = tpu.iota {dimensions = array<i32: 1>} : vector<2x8xi32>
      %35 = vector.broadcast %arg1 : i32 to vector<2x8xi32>
      %36 = arith.cmpi eq, %34, %35 : vector<2x8xi32>
      %c0_20 = arith.constant 0 : index
      %c0_21 = arith.constant 0 : index
      %37 = vector.load %arg8[%c0_20, %c0_21] : memref<2x8xf32, #tpu.memory_space<vmem>>, vector<2x8xf32>
      %38 = vector.shape_cast %33 : vector<2x1xf32> to vector<2x1xf32>
      %39 = vector.broadcast %38 : vector<2x1xf32> to vector<2x8xf32>
      %40 = arith.select %36, %39, %37 : vector<2x8xi1>, vector<2x8xf32>
      %c0_22 = arith.constant 0 : index
      %c0_23 = arith.constant 0 : index
      %41 = vector.load %arg8[%c0_22, %c0_23] : memref<2x8xf32, #tpu.memory_space<vmem>>, vector<2x8xf32>
      tpu.vector_store %arg8[%c0_22, %c0_23], %40 {strides = array<i32>} : memref<2x8xf32, #tpu.memory_space<vmem>>, vector<2x8xf32>,
    } else {
    }
    %c7_i32 = arith.constant 7 : i32
    %21 = arith.cmpi eq, %arg1, %c7_i32 : i32
    %c0_i32_14 = arith.constant 0 : i32
    %22 = arith.cmpi eq, %arg2, %c0_i32_14 : i32
    %23 = arith.andi %21, %22 : i1
    %24 = arith.extui %23 : i1 to i32
    %c0_i32_15 = arith.constant 0 : i32
    %25 = arith.cmpi ne, %24, %c0_i32_15 : i32
    scf.if %25 {
      %c0_16 = arith.constant 0 : index
      %c0_17 = arith.constant 0 : index
      %26 = vector.load %arg8[%c0_16, %c0_17] : memref<2x8xf32, #tpu.memory_space<vmem>>, vector<2x8xf32>
      %cst_18 = arith.constant dense<0xFF800000> : vector<2xf32>
      %27 = vector.multi_reduction <maximumf>, %26, %cst_18 [1] : vector<2x8xf32> to vector<2xf32>
      %28 = vector.shape_cast %27 : vector<2xf32> to vector<2x1xf32>
      %29 = vector.broadcast %28 : vector<2x1xf32> to vector<2x8xf32>
      %30 = arith.subf %26, %29 : vector<2x8xf32>
      %31 = math.exp %30 : vector<2x8xf32>
      %cst_19 = arith.constant dense<0.000000e+00> : vector<2xf32>
      %32 = vector.multi_reduction <add>, %31, %cst_19 [1] : vector<2x8xf32> to vector<2xf32>
      %33 = vector.shape_cast %32 : vector<2xf32> to vector<2x1xf32>
      %34 = vector.broadcast %33 : vector<2x1xf32> to vector<2x8xf32>
      %35 = arith.divf %31, %34 : vector<2x8xf32>
      %c0_20 = arith.constant 0 : index
      %c0_21 = arith.constant 0 : index
      %36 = vector.load %arg6[%c0_20, %c0_21] : memref<2x8xf32, #tpu.memory_space<vmem>>, vector<2x8xf32>
      tpu.vector_store %arg6[%c0_20, %c0_21], %35 {strides = array<i32>} : memref<2x8xf32, #tpu.memory_space<vmem>>, vector<2x8xf32>,
    } else {
    }
    return
  }
  func.func @transform_0(%arg0: i32, %arg1: i32, %arg2: i32, %arg3: memref<1xf32, #tpu.memory_space<smem>>) -> (i32, i32, i32) {
    %c0_i32 = arith.constant 0 : i32
    return %arg1, %arg0, %arg2 : i32, i32, i32
  }
  func.func @transform_1(%arg0: i32, %arg1: i32, %arg2: i32, %arg3: memref<1xf32, #tpu.memory_space<smem>>) -> (i32, i32) {
    %c0_i32 = arith.constant 0 : i32
    %c0_i32_0 = arith.constant 0 : i32
    %c0_i32_1 = arith.constant 0 : i32
    return %c0_i32, %c0_i32_0 : i32, i32
  }
  func.func @transform_2(%arg0: i32, %arg1: i32, %arg2: i32, %arg3: memref<1xf32, #tpu.memory_space<smem>>) -> (i32, i32) {
    %c0_i32 = arith.constant 0 : i32
    %c0_i32_0 = arith.constant 0 : i32
    return %arg0, %c0_i32 : i32, i32
  }
}

</mosaic_0001>

<bundles_post_ra>
// kernel: group_schema.1
= control target key start
LH: loop header
LB: loop body
LE: loop exit
PB: predicated region body
PF: predicated region fallthrough
CT: control target
= control target key end

     0   :  { %s620_s0 = inlined_call_operand.<no memory space> [shape: f32[1], index: 0, kind: input, shape index: {}]   ;;  %s621_s1 = inlined_call_operand.vmem [shape: f32[8,2,1024], index: 1, kind: input, shape index: {}]   ;;  %s622_s2 = inlined_call_operand.vmem [shape: f32[1,1024], index: 2, kind: input, shape index: {}]   ;;  %s623_s3 = inlined_call_operand.hbm [shape: f32[2,8], index: 3, kind: output, shape index: {}]  }
   0x1   :  { %8 = sst [smem:[#allocation5]] %s620_s0 }
   0x2   :  { %9 = vsyncpa [#allocation7], 0  ;;  %s556_s14 = smov 0   ;;  %s558_s15 = smov 0  }
   0x3   :  { %s560_s16 = smov 0  }
   0x4 LB: > { %s417_s0 = sadd.s32 4294967295, %s527_s16   ;;  %s30_s17 = sadd.s32 1, %s523_s15  ;;  %s527_s16 = sphi %s560_s16, %s15_s16   ;;  %s523_s15 = sphi %s558_s15, %s625_s15   ;;  %s519_s14 = sphi %s556_s14, %s624_s14  }
   0x5   : > { %p32_p0 = scmp.ge.s32.totalorder %s30_s17, 8  ;;  %p420_p1 = scmp.ge.s32.totalorder %s527_s16, 1 }
   0x6   : > { %p147_p2 = scmp.lt.s32.totalorder %s527_s16, 9 }
   0x7   : > { %s627_s17 = smov (%p32_p0, %s30_s17), 0 }
   0x8   : > { %p148_p3 = pnand %p420_p1, %p147_p2 }
   0x9   : > { %p173_p4 = scmp.lt.s32.totalorder (!%p148_p3), %s519_s14, 7  ;;  %p186_p5 = scmp.eq.s32.totalorder (!%p148_p3), %s519_s14, 0 }
   0xa   : > { %151 = sbr.rel (%p148_p3) target bundleno = 600 (0x258), region = 28 }
   0xf   : > { %s174_s18 = scalar_select %p173_p4, %s519_s14, 7  ;;  %vm192_vm0 = vcmask (%p186_p5), 58368   ;;  %v529_v0 = vmov (%p186_p5), 0.0  }
  0x10   : > { %191 = sbr.rel (!%p186_p5) target bundleno = 21 (0x15), region = 32  ;;  %193 = vst.msk [vmem:[#allocation3] sm:$0x3] (%p186_p5), %vm192_vm0, %v529_v0 }
  0x11   : > { %s429_s19 = sshll.u32 %s174_s18, 4 }
  0x12   : > { %s184_s22 = scalar_lea.vmem %s621_s1, %s429_s19 }
  0x15 PF: > { %v201_v1 = vld [vmem:[%s622_s2] sm:$0xff]  ;;  %vm217_vm1 = vcmask 1041408   ;;  %vm219_vm2 = vcmask 1045508   ;;  %vm221_vm3 = vcmask 1043456   ;;  %v200_v17 = vld [vmem:[%s184_s22 + $0x8] sm:$0xff]  ;;  %vm197_vm4 = vcmask 1024  }
  0x16   : > { %v203_v2 = vperm.slane %v201_v1, 0  ;;  %v204_v3 = vperm.slane %v201_v1, 1  ;;  %v205_v4 = vperm.slane %v201_v1, 2  ;;  %v206_v5 = vperm.slane %v201_v1, 3  ;;  %v199_v13 = vld [vmem:[%s184_s22] sm:$0xff]  ;;  %s276_s25 = sld [smem:[#allocation5]] }
  0x17   : > { %v207_v6 = vperm.slane %v201_v1, 4  ;;  %v208_v7 = vperm.slane %v201_v1, 5  ;;  %v209_v8 = vperm.slane %v201_v1, 6  ;;  %v210_v9 = vperm.slane %v201_v1, 7  ;;  %p309_p6 = scmp.eq.s32.totalorder %s519_s14, 7 }
  0x18   : > { %v211_v10 = vrot.slane %v204_v3, 6  ;;  %v212_v11 = vrot.slane %v205_v4, 4  ;;  %v213_v12 = vrot.slane %v206_v5, 2  ;;  %v530_v49 = vmov 0.0  }
  0x19   : > { %v214_v14 = vrot.slane %v208_v7, 6  ;;  %v215_v15 = vrot.slane %v209_v8, 4  ;;  %v216_v16 = vrot.slane %v210_v9, 2  ;;  %198 = vst.msk [vmem:[#allocation2] sm:$0x3] %vm197_vm4, %v530_v49  ;;  %v531_v50 = vmov 0  }
  0x1a   : > { %v218_v18 = vsel %vm217_vm1, %v203_v2, %v211_v10  ;;  %v220_v19 = vsel %vm219_vm2, %v212_v11, %v213_v12  ;;  %466 = vset.pattern.permute.xlu0 %v531_v50  ;;  %v298_v8 = vstv %s519_s14  ;;  %v300_v9 = vld [vmem:[#allocation3] sm:$0x3]  ;;  %vm307_vm10 = vcmask 58368  }
  0x1b   : > { %v222_v20 = vsel %vm221_vm3, %v218_v18, %v220_v19  ;;  %v223_v21 = vsel %vm217_vm1, %v207_v6, %v214_v14  ;;  %v224_v22 = vsel %vm219_vm2, %v215_v15, %v216_v16  ;;  %v296_v6 = vlaneseq }
  0x1c   : > { %v225_v23 = vsel %vm221_vm3, %v223_v21, %v224_v22  ;;  %v228_v24 = vmul.f32 %v222_v20, %v199_v13  ;;  %v277_v54 = vstv %s276_s25 }
  0x1d   : > { %v229_v25 = vmul.f32 %v225_v23, %v200_v17  ;;  %v297_v7 = vand.u32 127, %v296_v6 }
  0x1e   : > { %233 = vst [vmem:[#allocation1] ss:$4 sm:$0xff] %v228_v24 }
  0x1f   : > { %235 = vst [vmem:[#allocation1 + $0x20] ss:$4 sm:$0xff] %v229_v25  ;;  %vm299_vm9 = vcmp.eq.s32.totalorder %v297_v7, %v298_v8 }
  0x20   : > { %v230_v51 = vld [vmem:[#allocation2] sm:$0x3] }
  0x25   : > { %v236_v26 = vld.sshfl [vmem:[#allocation1] sm:$0xff pattern:$0x73625140]  ;;  %v237_v27 = vld.sshfl [vmem:[#allocation1 + $0x8] sm:$0xff pattern:$0x73625140] }
  0x26   : > { %v238_v28 = vld.sshfl [vmem:[#allocation1 + $0x10] sm:$0xff pattern:$0x73625140]  ;;  %v239_v29 = vld.sshfl [vmem:[#allocation1 + $0x18] sm:$0xff pattern:$0x73625140] }
  0x27   : > { %v252_v30 = vsel %vm217_vm1, %v236_v26, 0.0  ;;  %v253_v31 = vsel %vm217_vm1, %v237_v27, 0.0  ;;  %v255_v32 = vsel %vm217_vm1, %v238_v28, 0.0  ;;  %v240_v33 = vld.sshfl [vmem:[#allocation1 + $0x20] sm:$0xff pattern:$0x73625140] }
  0x28   : > { %v254_v34 = vadd.f32 %v253_v31, %v252_v30  ;;  %v257_v35 = vsel %vm217_vm1, %v239_v29, 0.0  ;;  %v241_v36 = vld.sshfl [vmem:[#allocation1 + $0x28] sm:$0xff pattern:$0x73625140]  ;;  %v259_v38 = vsel %vm217_vm1, %v240_v33, 0.0 }
  0x29   : > { %v242_v39 = vld.sshfl [vmem:[#allocation1 + $0x30] sm:$0xff pattern:$0x73625140]  ;;  %v261_v41 = vsel %vm217_vm1, %v241_v36, 0.0 }
  0x2a   : > { %v256_v37 = vadd.f32 %v255_v32, %v254_v34  ;;  %v243_v42 = vld.sshfl [vmem:[#allocation1 + $0x38] sm:$0xff pattern:$0x73625140]  ;;  %v263_v44 = vsel %vm217_vm1, %v242_v39, 0.0 }
  0x2b   : > { %v265_v46 = vsel %vm217_vm1, %v243_v42, 0.0 }
  0x2c   : > { %v258_v40 = vadd.f32 %v257_v35, %v256_v37 }
  0x2e   : > { %v260_v43 = vadd.f32 %v259_v38, %v258_v40 }
  0x30   : > { %v262_v45 = vadd.f32 %v261_v41, %v260_v43 }
  0x32   : > { %v264_v47 = vadd.f32 %v263_v44, %v262_v45 }
  0x34   : > { %v266_v48 = vadd.f32 %v265_v46, %v264_v47 }
  0x36   : > { %267 = vadd.xlane.f32.xlu0 %v266_v48 }
  0xa9   : > { %v268_v52 = vpop.xlane.xlu0 %267 }
  0xaa   : > { %v269_v53 = vadd.f32 %v268_v52, %v230_v51 }
  0xac   : > { %271 = vst.msk [vmem:[#allocation2] sm:$0x3] %vm197_vm4, %v269_v53 }
  0xb3   : > { %v275_v55 = vld [vmem:[#allocation2] sm:$0x3] }
  0xb4   : > { %v278_v56 = vadd.f32 %v277_v54, %v275_v55 }
  0xb6   : > { %v279_v57 = vand.u32 2147483647, %v278_v56 }
  0xb8   : > { %v280_v58 = vadd.f32 1.0, %v279_v57 }
  0xba   : > { %467 = vrcp.f32 %v280_v58  ;;  %v292_v62 = vand.u32 2147483648, %v280_v58  ;;  %v290_v0 = vand.u32 2147483647, %v280_v58  ;;  %vm286_vm6 = vweird.f32 %v280_v58 }
  0xbc   : > { %v293_v2 = vor.u32 1.1754944e-38, %v292_v62  ;;  %vm291_vm8 = vcmp.eq.f32.partialorder %v290_v0, 8.507059e+37 }
  0xc0   : > { %v468_v59 = vpop.eup %467 }
  0xc1   : > { %v282_v60 = vmul.f32 %v468_v59, %v280_v58  ;;  %vm287_vm5 = vweird.f32 %v468_v59 }
  0xc2   : > { %vm288_vm7 = vmor %vm286_vm6, %vm287_vm5 }
  0xc3   : > { %v283_v61 = vsub.f32 1.0, %v282_v60 }
  0xc5   : > { %v284_v63 = vmul.f32 %v468_v59, %v283_v61 }
  0xc7   : > { %v285_v1 = vadd.f32 %v468_v59, %v284_v63 }
  0xc9   : > { %v289_v3 = vsel %vm288_vm7, %v468_v59, %v285_v1 }
  0xca   : > { %v294_v4 = vsel %vm291_vm8, %v293_v2, %v289_v3 }
  0xcb   : > { %v295_v5 = vmul.f32 %v294_v4, %v279_v57 }
  0xcd   : > { %303 = vperm.xlu0 %466, %v295_v5  }
 0x13d   : > { %313 = sbr.rel (!%p309_p6) target bundleno = 594 (0x252), region = 44 }
 0x13f   : > { %v304_v10 = vpop.permute.xlu0 %303 }
 0x140   : > { %v306_v11 = vsel %vm299_vm9, %v304_v10, %v300_v9 }
 0x141   : > { %308 = vst.msk [vmem:[#allocation3] sm:$0x3] %vm307_vm10, %v306_v11 }
 0x148   : > { %v314_v12 = vld [vmem:[#allocation3] sm:$0x3] }
 0x149   : > { %v316_v13 = vsel %vm307_vm10, %v314_v12, -inf }
 0x14a   : > { %317 = vmax.xlane.f32.xlu0 %v316_v13 }
 0x1bd   : > { %v318_v14 = vpop.xlane.xlu0 %317 }
 0x1be   : > { %v319_v15 = vsub.f32 %v314_v12, %v318_v14 }
 0x1c0   : > { %v320_v16 = vmul.f32 1.442695, %v319_v15 }
 0x1c2   : > { %469 = vpow2.f32 %v320_v16 }
 0x1c8   : > { %v470_v17 = vpop.eup %469 }
 0x1c9   : > { %v322_v18 = vsel %vm307_vm10, %v470_v17, 0.0 }
 0x1ca   : > { %323 = vadd.xlane.f32.xlu0 %v322_v18 }
 0x23d   : > { %v324_v19 = vpop.xlane.xlu0 %323 }
 0x23e   : > { %471 = vrcp.f32 %v324_v19  ;;  %v336_v23 = vand.u32 2147483648, %v324_v19  ;;  %v334_v25 = vand.u32 2147483647, %v324_v19  ;;  %vm330_vm12 = vweird.f32 %v324_v19 }
 0x240   : > { %v337_v27 = vor.u32 1.1754944e-38, %v336_v23  ;;  %vm335_vm14 = vcmp.eq.f32.partialorder %v334_v25, 8.507059e+37 }
 0x244   : > { %v472_v20 = vpop.eup %471 }
 0x245   : > { %v326_v21 = vmul.f32 %v472_v20, %v324_v19  ;;  %vm331_vm11 = vweird.f32 %v472_v20 }
 0x246   : > { %vm332_vm13 = vmor %vm330_vm12, %vm331_vm11 }
 0x247   : > { %v327_v22 = vsub.f32 1.0, %v326_v21 }
 0x249   : > { %v328_v24 = vmul.f32 %v472_v20, %v327_v22 }
 0x24b   : > { %v329_v26 = vadd.f32 %v472_v20, %v328_v24 }
 0x24d   : > { %v333_v28 = vsel %vm332_vm13, %v472_v20, %v329_v26 }
 0x24e   : > { %v338_v29 = vsel %vm335_vm14, %v337_v27, %v333_v28 }
 0x24f   : > { %v339_v30 = vmul.f32 %v470_v17, %v338_v29 }
 0x251   : > { %340 = vst.msk [vmem:[#allocation6] sm:$0x3] %vm307_vm10, %v339_v30 }
 0x252 PF: > { %p436_p7 = scmp.eq.s32.totalorder %s417_s0, 7  ;;  %s351_s28 = sshll.u32 %s623_s3, 4  ;;  %s352_s28 = int_to_ptr.hbm [resolvable:$true] %s351_s28 }
 0x253   : > { %s532_s29 = smov [#allocation6]  }
 0x254   : > { %s349_s30 = sshll.u32 %s532_s29, 4  ;;  %s350_s30 = int_to_ptr.vmem [resolvable:$true] %s349_s30 }
 0x255   : > { %433 = dma.vmem_to_hbm [thread:$0]  (%p436_p7), %s350_s30, 32, %s352_s28, [#allocation7]  }
 0x256   : > { %514 = dma.done.wait (%p436_p7), [#allocation7], 32  }
 0x257   : > { %516 = vsyncadd (%p436_p7), [#allocation7], 4294967264 }
 0x258 PF: > { %s15_s16 = sadd.s32 1, %s527_s16   ;;  %s624_s14 = smov %s523_s15 }
 0x259   : > { %p12_p8 = scmp.ge.s32.totalorder %s15_s16, 10   ;;  %s625_s15 = smov %s627_s17 }
 0x25b   :  { %14 = sbr.rel (!%p12_p8) target bundleno = 4 (0x4), region = 73 }
 0x260   :  { %365 = vsyncpa [#allocation7], 1 }
 0x261   :  { %367 = vsyncpa [#allocation7 + $0x1], 1 }

</bundles_post_ra>
